<compile_context>
chip_gen: v7x
topology: tpu7x:2x2x1
jax: 0.10.0
libtpu: 0.0.40
codegen_flags: <defaults>
</compile_context>

<pallas_src>
import jax
import jax.numpy as jnp
from jax.experimental import pallas as pl
from jax.experimental.pallas import tpu as pltpu

TAU = 2.0
V_TH = 1.0
BN_EPS = 1e-5


def _spiking_patch_embed_kernel(w_ref, p_ref, thr_ref, o_ref):
    # w_ref:   (E, K)      BN-scale-folded projection weight (bf16), resident
    # p_ref:   (1, K, tm)  patch columns for one batch element (bf16), lane-dense
    # thr_ref: (E, 1)      per-channel spike threshold  V_TH*TAU - (bias + BN shift)
    # o_ref:   (1, E, tm)  spikes in {0., 1.} (bf16), lane-dense along tm
    h = jnp.dot(w_ref[...], p_ref[0], preferred_element_type=jnp.float32)
    o_ref[0] = (h >= thr_ref[...]).astype(o_ref.dtype)
    # TODO(synk): surrogate.Sigmoid only shapes the backward pass; forward is exact Heaviside.


def spiking_patch_embed_3d(x, weight, bias, gamma, beta, run_mean, run_var,
                           patch_size=(2, 2, 2), tm=2048):
    """x: (N, C, D, H, W) f32. weight: (E, C, pd, ph, pw).
    Returns (N, E, Do, Ho, Wo) bfloat16 spikes in {0., 1.} (values exact in bf16)."""
    N, C, D, H, W = x.shape
    pd, ph, pw = patch_size
    E = weight.shape[0]
    Do, Ho, Wo = D // pd, H // ph, W // pw
    Mn = Do * Ho * Wo                     # spatial patches per batch element
    K = C * pd * ph * pw

    # --- glue: per-batch patchify into a lane-dense (N, K, Mn) bf16 matrix ---
    # (cast BEFORE the rearrange so the transpose pass moves bf16, not f32)
    xp = x.astype(jnp.bfloat16).reshape(N, C, Do, pd, Ho, ph, Wo, pw)
    xp = xp.transpose(0, 1, 3, 5, 7, 2, 4, 6)      # (N, C, pd, ph, pw, Do, Ho, Wo)
    patches = xp.reshape(N, K, Mn)

    # --- glue: fuse conv bias + BatchNorm3d(eval) + LIF charge into W and thr ---
    scale = gamma / jnp.sqrt(run_var + BN_EPS)                     # (E,)
    shift = beta + (bias - run_mean) * scale                       # (E,)
    # sign-safe fold: scale goes INTO the matmul (per weight row), never into the
    # inequality (negative BN gamma would otherwise flip the Heaviside).
    w2d = (weight.reshape(E, K).astype(jnp.float32) * scale[:, None]).astype(jnp.bfloat16)
    # spike  <=>  (scale*Wx + shift)/TAU >= V_TH  <=>  (scale*W)x >= V_TH*TAU - shift
    thr = (V_TH * TAU - shift).astype(jnp.float32).reshape(E, 1)

    # --- tiling: lane axis = per-batch spatial patches, 128-aligned tiles ---
    if Mn <= tm:
        tm = Mn                                    # full extent (always legal)
    else:
        tm = max(128, (tm // 128) * 128)           # 128-multiple, boundary block clipped
    # v7x has 2 TensorCores: make sure there are >= 2 parallel grid steps when feasible.
    if N * pl.cdiv(Mn, tm) < 2 and Mn >= 256:
        tm = (((Mn + 1) // 2) + 127) // 128 * 128
    grid_m = pl.cdiv(Mn, tm)                       # no jnp.pad: Pallas clips the last block

    cost = pl.CostEstimate(
        flops=2 * N * Mn * K * E,
        transcendentals=0,
        bytes_accessed=2 * N * K * Mn + 2 * E * K + 4 * E + 2 * N * E * Mn,
    )

    out3d = pl.pallas_call(
        _spiking_patch_embed_kernel,
        out_shape=jax.ShapeDtypeStruct((N, E, Mn), jnp.bfloat16),
        grid_spec=pltpu.PrefetchScalarGridSpec(
            num_scalar_prefetch=0,
            grid=(N, grid_m),
            in_specs=[
                pl.BlockSpec((E, K), lambda n, i: (0, 0)),         # resident fused weight
                pl.BlockSpec((1, K, tm), lambda n, i: (n, 0, i)),  # patch tile (lane-dense)
                pl.BlockSpec((E, 1), lambda n, i: (0, 0)),         # per-channel threshold
            ],
            out_specs=pl.BlockSpec((1, E, tm), lambda n, i: (n, 0, i)),
        ),
        compiler_params=pltpu.CompilerParams(
            dimension_semantics=("parallel", "parallel"),
            allow_input_fusion=[False, True, False],  # let XLA fuse patchify into the input
        ),
        cost_estimate=cost,
    )(w2d, patches, thr)

    # Free reshape (no transpose, no extra HBM pass): (N, E, Mn) -> (N, E, Do, Ho, Wo)
    return out3d.reshape(N, E, Do, Ho, Wo)


def _reference_preact(x, weight, bias, gamma, beta, run_mean, run_var, patch_size=(2, 2, 2)):
    """Plain-JAX f32 reference: pre-threshold membrane potential v = BN(conv)/TAU."""
    conv = jax.lax.conv_general_dilated(
        x, weight, window_strides=patch_size, padding="VALID",
        dimension_numbers=("NCDHW", "OIDHW", "NCDHW"))
    conv = conv + bias.reshape(1, -1, 1, 1, 1)
    bc = lambda a: a.reshape(1, -1, 1, 1, 1)
    bn = bc(gamma) * (conv - bc(run_mean)) / jnp.sqrt(bc(run_var) + BN_EPS) + bc(beta)
    return bn / TAU


if __name__ == "__main__":
    key = jax.random.PRNGKey(0)
    N, C, D, H, W = 2, 4, 16, 16, 16
    E = 32
    patch_size = (2, 2, 2)
    pd, ph, pw = patch_size

    k1, k2, k3, k4, k5, k6, k7 = jax.random.split(key, 7)
    x = jax.random.normal(k1, (N, C, D, H, W), dtype=jnp.float32) * 2.0
    weight = jax.random.normal(k2, (E, C, pd, ph, pw), dtype=jnp.float32) * 0.3
    bias = jax.random.normal(k3, (E,), dtype=jnp.float32) * 0.1
    gamma = 1.0 + 0.1 * jax.random.normal(k4, (E,), dtype=jnp.float32)
    beta = 0.1 * jax.random.normal(k5, (E,), dtype=jnp.float32)
    run_mean = 0.05 * jax.random.normal(k6, (E,), dtype=jnp.float32)
    run_var = 1.0 + 0.1 * jax.random.uniform(k7, (E,), dtype=jnp.float32)

    out = spiking_patch_embed_3d(x, weight, bias, gamma, beta, run_mean, run_var,
                                 patch_size=patch_size)
    out = jax.block_until_ready(out)

    Do, Ho, Wo = D // pd, H // ph, W // pw
    assert out.shape == (N, E, Do, Ho, Wo), out.shape
    assert out.dtype == jnp.bfloat16, out.dtype
    assert bool(jnp.all((out == 0.0) | (out == 1.0))), "output must be binary spikes"

    # Tolerance-banded correctness check: the kernel runs the GEMM in bf16 (f32
    # accumulate, BN scale folded into the weights), so spike bits are only
    # required to match the f32 reference where the membrane potential is not
    # within a small band of the threshold.
    v_ref = _reference_preact(x, weight, bias, gamma, beta, run_mean, run_var, patch_size)
    ref_spikes = (v_ref >= V_TH).astype(jnp.float32)
    decisive = jnp.abs(v_ref - V_TH) > 0.15
    assert bool(jnp.all(jnp.where(decisive, out.astype(jnp.float32) == ref_spikes, True))), \
        "spike mismatch vs reference outside threshold tolerance band"

    print("KERNEL_OK")
</pallas_src>

<mosaic_0001>
module attributes {stable_mosaic.version = 11 : i64} {
  func.func @_spiking_patch_embed_kernel(%arg0: i32, %arg1: i32, %arg2: memref<32x32xbf16, #tpu.memory_space<vmem>>, %arg3: memref<1x32x512xbf16, #tpu.memory_space<vmem>>, %arg4: memref<32x1xf32, #tpu.memory_space<vmem>>, %arg5: memref<1x32x512xbf16, #tpu.memory_space<vmem>>) attributes {dimension_semantics = [#tpu.dimension_semantics<parallel>, #tpu.dimension_semantics<parallel>], iteration_bounds = array<i64: 2, 1>, scalar_prefetch = 0 : i64, scratch_operands = 0 : i64, tpu.core_type = #tpu.core_type<tc>, window_params = [{pipeline_mode = #tpu.pipeline_mode<synchronous>, transform_indices = @transform_0, window_bounds = array<i64: 32, 32>}, {transform_indices = @transform_1, window_bounds = array<i64: 1, 32, 512>}, {pipeline_mode = #tpu.pipeline_mode<synchronous>, transform_indices = @transform_2, window_bounds = array<i64: 32, 1>}, {transform_indices = @transform_3, window_bounds = array<i64: 1, 32, 512>}]} {
    %c0 = arith.constant 0 : index
    %c0_0 = arith.constant 0 : index
    %0 = vector.load %arg2[%c0, %c0_0] : memref<32x32xbf16, #tpu.memory_space<vmem>>, vector<32x32xbf16>
    %c0_1 = arith.constant 0 : index
    %c0_2 = arith.constant 0 : index
    %c0_3 = arith.constant 0 : index
    %1 = vector.load %arg3[%c0_1, %c0_2, %c0_3] : memref<1x32x512xbf16, #tpu.memory_space<vmem>>, vector<1x32x512xbf16>
    %2 = vector.shape_cast %1 : vector<1x32x512xbf16> to vector<32x512xbf16>
    %cst = arith.constant dense<0.000000e+00> : vector<32x512xf32>
    %3 = tpu.matmul %0, %2, %cst {dimension_numbers = #tpu.dot_dimension_numbers<[1], [0], [0], [1], [0, 0, 1, 1], [], []>} : vector<32x32xbf16>, vector<32x512xbf16>, vector<32x512xf32> -> vector<32x512xf32>
    %c0_4 = arith.constant 0 : index
    %c0_5 = arith.constant 0 : index
    %4 = vector.load %arg4[%c0_4, %c0_5] : memref<32x1xf32, #tpu.memory_space<vmem>>, vector<32x1xf32>
    %5 = vector.broadcast %4 : vector<32x1xf32> to vector<32x512xf32>
    %6 = arith.cmpf oge, %3, %5 : vector<32x512xf32>
    %7 = arith.extui %6 : vector<32x512xi1> to vector<32x512xi32>
    %8 = arith.sitofp %7 : vector<32x512xi32> to vector<32x512xf32>
    %9 = arith.truncf %8 : vector<32x512xf32> to vector<32x512xbf16>
    %c0_6 = arith.constant 0 : index
    %c0_7 = arith.constant 0 : index
    %c0_8 = arith.constant 0 : index
    %10 = vector.load %arg5[%c0_6, %c0_7, %c0_8] : memref<1x32x512xbf16, #tpu.memory_space<vmem>>, vector<1x32x512xbf16>
    %11 = vector.shape_cast %10 : vector<1x32x512xbf16> to vector<32x512xbf16>
    %12 = vector.shape_cast %9 : vector<32x512xbf16> to vector<1x32x512xbf16>
    tpu.vector_store %arg5[%c0_6, %c0_7, %c0_8], %12 {strides = array<i32>} : memref<1x32x512xbf16, #tpu.memory_space<vmem>>, vector<1x32x512xbf16>,
    return
  }
  func.func @transform_0(%arg0: i32, %arg1: i32) -> (i32, i32) {
    %c0_i32 = arith.constant 0 : i32
    %c0_i32_0 = arith.constant 0 : i32
    %c0_i32_1 = arith.constant 0 : i32
    return %c0_i32, %c0_i32_0 : i32, i32
  }
  func.func @transform_1(%arg0: i32, %arg1: i32) -> (i32, i32, i32) {
    %c0_i32 = arith.constant 0 : i32
    %c0_i32_0 = arith.constant 0 : i32
    return %arg0, %c0_i32, %arg1 : i32, i32, i32
  }
  func.func @transform_2(%arg0: i32, %arg1: i32) -> (i32, i32) {
    %c0_i32 = arith.constant 0 : i32
    %c0_i32_0 = arith.constant 0 : i32
    %c0_i32_1 = arith.constant 0 : i32
    return %c0_i32, %c0_i32_0 : i32, i32
  }
  func.func @transform_3(%arg0: i32, %arg1: i32) -> (i32, i32, i32) {
    %c0_i32 = arith.constant 0 : i32
    %c0_i32_0 = arith.constant 0 : i32
    return %arg0, %c0_i32, %arg1 : i32, i32, i32
  }
}

</mosaic_0001>

<bundles_post_ra>
// kernel: tpu_custom_call.1
= control target key start
LH: loop header
LB: loop body
LE: loop exit
PB: predicated region body
PF: predicated region fallthrough
CT: control target
= control target key end

     0   :  { %8 = vsyncpa [#allocation3], 0  ;;  %s1113_s0 = inlined_call_operand.vmem [shape: bf16[32,32], index: 0, kind: input, shape index: {}]   ;;  %s1114_s1 = inlined_call_operand.hbm [shape: bf16[2,32,512], index: 1, kind: input, shape index: {}]   ;;  %s1115_s2 = inlined_call_operand.vmem [shape: f32[32,1], index: 2, kind: input, shape index: {}]   ;;  %s1116_s3 = inlined_call_operand.hbm [shape: bf16[2,32,512], index: 3, kind: output, shape index: {}]  }
   0x1   :  { %10 = vsyncpa [#allocation3 + $0x1], 0 }
   0x2   :  { %11 = vsyncpa [#allocation4], 0 }
   0x3   :  { %13 = vsyncpa [#allocation4 + $0x1], 0  ;;  %s905_s12 = smov 0   ;;  %s907_s13 = smov 0  }
   0x4   :  { %s909_s14 = smov 0   ;;  %s911_s15 = smov 0  }
   0x5   :  { %s913_s16 = smov 0   ;;  %s915_s17 = smov 0  }
   0x6 LB: > { %s616_s18 = sadd.s32 4294967295, %s875_s17   ;;  %s617_s19 = sadd.s32 4294967294, %s875_s17   ;;  %s875_s17 = sphi %s915_s17, %s19_s17   ;;  %s871_s16 = sphi %s913_s16, %s1131_s16   ;;  %s867_s15 = sphi %s911_s15, %s1130_s15   ;;  %s863_s14 = sphi %s909_s14, %s1129_s14   ;;  %s859_s13 = sphi %s907_s13, %s1128_s13   ;;  %s855_s12 = sphi %s905_s12, %s1127_s12  }
   0x7   : > { %s31_s20 = sadd.s32 1, %s871_s16  ;;  %s61_s21 = sadd.s32 1, %s863_s14 }
   0x8   : > { %p33_p0 = scmp.ge.s32.totalorder %s31_s20, 2  ;;  %p68_p1 = scmp.ne.s32.totalorder %s863_s14, %s859_s13 }
   0x9   : > { %p69_p2 = scmp.eq.s32.totalorder %s875_s17, 0  ;;  %p74_p3 = scmp.ne.s32.totalorder %s859_s13, %s855_s12 }
   0xa   : > { %s1133_s20 = smov (%p33_p0, %s31_s20), 0  ;;  %p75_p5 = scmp.eq.s32.totalorder %s616_s18, 0 }
   0xb   : > { %p946_p4 = por %p69_p2, %p68_p1  ;;  %s56_s23 = ssub.s32 %s871_s16, %s1133_s20 }
   0xc   : > { %p121_p6 = scmp.eq.s32.totalorder %s616_s18, 1  ;;  %p59_p7 = scmp.eq.s32.totalorder %s56_s23, 0 }
   0xd   : > { %p952_p8 = por %p75_p5, %p74_p3  ;;  %p127_p10 = scmp.eq.s32.totalorder %s617_s19, 1 }
   0xe   : > { %p956_p9 = por %p121_p6, %p68_p1  ;;  %p691_p13 = scmp.lt.s32.totalorder %s875_s17, 2 }
   0xf   : > { %s961_s26 = scalar_select %p59_p7, %s863_s14, %s61_s21  }
  0x10   : > { %s1120_s25 = scalar_select %p956_p9, 1, 0 }
  0x11   : > { %p963_p11 = por %p127_p10, %p74_p3  ;;  %s153_s28 = sand.u32 1, %s863_s14  }
  0x12   : > { %s620_s29 = sshll.u32 %s153_s28, 6  ;;  %s669_s30 = sshll.u32 %s871_s16, 10 }
  0x13   : > { %s1121_s27 = scalar_select %p963_p11, 1, 0 }
  0x14   : > { %s974_s6 = scalar_lea.hbm %s1114_s1, %s669_s30  ;;  %s157_s7 = scalar_lea.vmem [#allocation2], %s620_s29 }
  0x15   : > { %s166_s8 = sshll.u32 %s157_s7, 4  ;;  %p980_p0 = pnand %p691_p13, %p946_p4  ;;  %s976_s8 = int_to_ptr.vmem [resolvable:$true] %s166_s8 }
  0x16   : > { %s985_s10 = scalar_lea.sflag [#allocation3], %s153_s28  ;;  %s763_s11 = scalar_lea.hbm %s974_s6, 1024 }
  0x17   : > { %p764_p2 = scmp.ne.s32.totalorder %s974_s6, %s763_s11  ;;  %p765_p3 = pneg %p980_p0 }
  0x18   : > { %s768_s21 = scalar_lea.hbm %s1114_s1, 2048  ;;  %p769_p4 = scmp.lt.u32.totalorder %s974_s6, %s1114_s1 }
  0x19   : > { %p766_p5 = pnand %p765_p3, %p764_p2  ;;  %p770_p7 = scmp.lt.u32.totalorder %s768_s21, %s763_s11 }
  0x1a   : > { %p772_p13 = scmp.lt.u32.totalorder %s763_s11, %s974_s6 }
  0x1b   : > { %p767_p6 = pneg %p766_p5  ;;  %p771_p10 = por %p770_p7, %p769_p4 }
  0x1d   : > { %p773_p12 = por %p772_p13, %p771_p10 }
  0x1f   : > { %p774_p1 = pnand %p773_p12, %p767_p6 }
  0x21   : > { %777 = shalt.err (!%p774_p1)
}
  0x22   : > { %s778_s28 = scalar_lea.vmem %s976_s8, 1024  ;;  %s877_s29 = smov [#allocation2]  }
  0x23   : > { %p779_p2 = scmp.ne.s32.totalorder %s976_s8, %s778_s28  ;;  %s783_s30 = sshll.u32 %s877_s29, 4  ;;  %s784_s30 = int_to_ptr.vmem [resolvable:$false] %s783_s30 }
  0x24   : > { %s785_s4 = scalar_lea.vmem %s784_s30, 2048  ;;  %p786_p9 = scmp.lt.s32.totalorder %s976_s8, %s784_s30 }
  0x25   : > { %p781_p5 = pnand %p779_p2, %p765_p3  ;;  %p787_p4 = scmp.lt.s32.totalorder %s785_s4, %s778_s28 }
  0x27   : > { %p782_p11 = pneg %p781_p5  ;;  %p788_p7 = por %p787_p4, %p786_p9 }
  0x29   : > { %p789_p10 = pnand %p788_p7, %p782_p11 }
  0x2b   : > { %792 = shalt.err (!%p789_p10)
}
  0x2c   : > { %s878_s5 = smov 256   ;;  %s879_s7 = smov 16  }
  0x2d   : > { %686 = dma.hbm_to_vmem [thread:$0]  (!%p980_p0), %s974_s6, 1024, %s976_s8, %s985_s10, %s878_s5, %s878_s5, %s879_s7  }
  0x2e   : > { %p174_p12 = scmp.lt.s32.totalorder %s875_s17, 3  ;;  %p1123_p1 = scmp.ge.s32.totalorder %s875_s17, 1 }
  0x30   : > { %p175_p3 = pnand %p1123_p1, %p174_p12 }
  0x31   : > { %s1017_s11 = sand.u32 (!%p175_p3), 1, %s859_s13  }
  0x32   : > { %178 = sbr.rel (%p175_p3) target bundleno = 312 (0x138), region = 32  ;;  %s624_s18 = sshll.u32 (!%p175_p3), %s1017_s11, 6 }
  0x33   : > { %s181_s19 = scalar_lea.sflag (!%p175_p3), [#allocation3], %s1017_s11  ;;  %s184_s21 = scalar_lea.vmem (!%p175_p3), [#allocation2], %s624_s18 }
  0x39   : > { %846 = dma.done.wait (%p952_p8), %s181_s19, 1024  }
  0x3a   : > { %848 = vsyncadd (%p952_p8), %s181_s19, 4294966272  ;;  %v880_v0 = vmov 0   ;;  %v749_v1 = vld [vmem:[%s184_s21 + $0x4] ss:$16 sps:$4 sm:$0xff]   ;;  %v751_v2 = vld [vmem:[%s184_s21 + $0xc] ss:$16 sps:$4 sm:$0xff]  }
  0x3b   : > { %311 = vmatprep.mubr.bf16.mxu0 %v880_v0  ;;  %364 = vmatprep.mubr.bf16.mxu1 %v880_v0  ;;  %v753_v3 = vld [vmem:[%s184_s21] ss:$16 sps:$4 sm:$0xff]   ;;  %v754_v4 = vld [vmem:[%s184_s21 + $0x8] ss:$16 sps:$4 sm:$0xff]   ;;  %v755_v5 = vld [vmem:[%s184_s21 + $0x24] ss:$16 sps:$4 sm:$0xff]  }
  0x3c   : > { %747 = vset.pattern.permute.xlu0 %v880_v0  ;;  %748 = vset.pattern.permute.xlu1 %v880_v0  ;;  %v757_v6 = vld [vmem:[%s184_s21 + $0x2c] ss:$16 sps:$4 sm:$0xff]   ;;  %v759_v7 = vld [vmem:[%s184_s21 + $0x20] ss:$16 sps:$4 sm:$0xff]   ;;  %v760_v8 = vld [vmem:[%s184_s21 + $0x28] ss:$16 sps:$4 sm:$0xff]  }
  0x3d   : > { %279 = vmatprep.subr.bf16.mxu0 %v749_v1  ;;  %332 = vmatprep.subr.bf16.mxu1 %v751_v2  ;;  %v761_v9 = vld [vmem:[%s1113_s0] sm:$0xff]   ;;  %vm272_vm0 = vcmask 261120   ;;  %v387_v11 = vld [vmem:[%s1115_s2 + $0x10] sm:$0xff]  ;;  %v386_v12 = vld [vmem:[%s1115_s2 + $0x8] sm:$0xff]  ;;  %v881_v22 = vmov 0.0   ;;  %s1047_s7 = scalar_lea.vmem [#allocation5], %s624_s18 }
  0x3e   : > { %280 = vmatpush1.bf16.msra.mxu0 %v753_v3  ;;  %333 = vmatpush1.bf16.msra.mxu1 %v754_v4  ;;  %v385_v10 = vld [vmem:[%s1115_s2] sm:$0xff]  ;;  %v388_v13 = vld [vmem:[%s1115_s2 + $0x18] sm:$0xff]  ;;  %v762_v14 = vld [vmem:[%s1113_s0 + $0x8] sm:$0xff]   ;;  %s529_s18 = sshll.u32 %s1047_s7, 4  ;;  %s678_s19 = sshll.u32 %s867_s15, 10  ;;  %s1055_s18 = int_to_ptr.vmem [resolvable:$true] %s529_s18 }
  0x3f   : > { %281 = vmatprep.subr.bf16.mxu0 %v755_v5  ;;  %334 = vmatprep.subr.bf16.mxu1 %v757_v6  ;;  %s1062_s24 = scalar_lea.hbm %s1116_s3, %s678_s19  ;;  %s514_s6 = scalar_lea.sflag [#allocation4], %s1017_s11 }
  0x40   : > { %391 = vperm.xlu0 %747, %v385_v10   ;;  %401 = vperm.xlu1 %748, %v387_v11   ;;  %s793_s8 = scalar_lea.vmem %s1055_s18, 1024  ;;  %p1124_p9 = scmp.ne.s32.totalorder %s1120_s25, 0 }
  0x41   : > { %p794_p8 = scmp.ne.s32.totalorder %s1055_s18, %s793_s8  ;;  %s882_s9 = smov [#allocation5]  }
  0x42   : > { %282 = vmatpush1.bf16.msra.mxu0 %v759_v7  ;;  %335 = vmatpush1.bf16.msra.mxu1 %v760_v8  ;;  %s797_s10 = sshll.u32 %s882_s9, 4  ;;  %s798_s10 = int_to_ptr.vmem [resolvable:$false] %s797_s10 }
  0x43   : > { %p795_p11 = pnand %p794_p8, %p1124_p9  ;;  %s799_s22 = scalar_lea.vmem %s798_s10, 2048 }
  0x44   : > { %396 = vperm.xlu0 %747, %v386_v12   ;;  %406 = vperm.xlu1 %748, %v388_v13   ;;  %p800_p6 = scmp.lt.s32.totalorder %s1055_s18, %s798_s10  ;;  %p801_p13 = scmp.lt.s32.totalorder %s799_s22, %s793_s8 }
  0x45   : > { %636 = vmatmul.mubr.msk.bf16.vlgmr.msra.gmra.mrb[0].mxu0 %vm272_vm0, %v761_v9  ;;  %638 = vmatmul.mubr.msk.bf16.vlgmr.msra.gmra.mrb[0].mxu1 %vm272_vm0, %v761_v9  ;;  %p796_p0 = pneg %p795_p11 }
  0x46   : > { %321 = vmatprep.mubr.bf16.mxu0 %v880_v0  ;;  %374 = vmatprep.mubr.bf16.mxu1 %v880_v0  ;;  %p802_p2 = por %p801_p13, %p800_p6 }
  0x48   : > { %p803_p5 = pnand %p802_p2, %p796_p0 }
  0x4d   : > { %637 = vmatmul.mubr.msk.bf16.gmra.mrb[4].mxu0 %vm272_vm0, %v762_v14  ;;  %639 = vmatmul.mubr.msk.bf16.gmra.mrb[4].mxu1 %vm272_vm0, %v762_v14 }
  0xbf   : > { %v392_v15 = vpop.permute.xlu0 %391  ;;  %v402_v17 = vpop.permute.xlu1 %401 }
  0xc3   : > { %v397_v16 = vpop.permute.xlu0 %396  ;;  %v407_v39 = vpop.permute.xlu1 %406 }
 0x118   : > { %v313_v18 = vpop.f32.mrb[0].mxu0  ;;  %v366_v19 = vpop.f32.mrb[0].mxu1 }
 0x119   : > { %vm409_vm1 = vcmp.ge.f32.partialorder %v313_v18, %v392_v15  ;;  %vm411_vm2 = vcmp.ge.f32.partialorder %v366_v19, %v392_v15  ;;  %v315_v20 = vpop.f32.mrb[1].mxu0  ;;  %v368_v21 = vpop.f32.mrb[1].mxu1 }
 0x11a   : > { %v640_v23 = vsel %vm409_vm1, 1.0, %v881_v22  ;;  %v642_v24 = vsel %vm411_vm2, 1.0, %v881_v22  ;;  %vm410_vm3 = vcmp.ge.f32.partialorder %v315_v20, %v392_v15  ;;  %vm412_vm4 = vcmp.ge.f32.partialorder %v368_v21, %v392_v15  ;;  %v317_v25 = vpop.f32.mrb[2].mxu0  ;;  %v370_v26 = vpop.f32.mrb[2].mxu1 }
 0x11b   : > { %v641_v27 = vsel %vm410_vm3, 1.0, %v881_v22  ;;  %v643_v28 = vsel %vm412_vm4, 1.0, %v881_v22  ;;  %vm413_vm5 = vcmp.ge.f32.partialorder %v317_v25, %v397_v16  ;;  %vm415_vm6 = vcmp.ge.f32.partialorder %v370_v26, %v397_v16  ;;  %v319_v29 = vpop.f32.mrb[3].mxu0  ;;  %v372_v30 = vpop.f32.mrb[3].mxu1 }
 0x11c   : > { %v670_v31 = vpack.c.bf16 %v641_v27, %v640_v23  ;;  %v671_v32 = vpack.c.bf16 %v643_v28, %v642_v24  ;;  %v644_v33 = vsel %vm413_vm5, 1.0, %v881_v22  ;;  %v646_v34 = vsel %vm415_vm6, 1.0, %v881_v22 }
 0x11d   : > { %vm414_vm7 = vcmp.ge.f32.partialorder %v319_v29, %v397_v16  ;;  %vm416_vm8 = vcmp.ge.f32.partialorder %v372_v30, %v397_v16 }
 0x11e   : > { %505 = vst [vmem:[%s1047_s7] sm:$0xff] %v670_v31  ;;  %506 = vst [vmem:[%s1047_s7 + $0x8] sm:$0xff] %v671_v32  ;;  %v645_v35 = vsel %vm414_vm7, 1.0, %v881_v22  ;;  %v647_v36 = vsel %vm416_vm8, 1.0, %v881_v22 }
 0x11f   : > { %v672_v37 = vpack.c.bf16 %v645_v35, %v644_v33  ;;  %v673_v38 = vpack.c.bf16 %v647_v36, %v646_v34 }
 0x120   : > { %v323_v40 = vpop.f32.mrb[4].mxu0  ;;  %v376_v41 = vpop.f32.mrb[4].mxu1 }
 0x121   : > { %507 = vst [vmem:[%s1047_s7 + $0x10] sm:$0xff] %v672_v37  ;;  %508 = vst [vmem:[%s1047_s7 + $0x18] sm:$0xff] %v673_v38  ;;  %vm417_vm9 = vcmp.ge.f32.partialorder %v323_v40, %v402_v17  ;;  %vm419_vm10 = vcmp.ge.f32.partialorder %v376_v41, %v402_v17  ;;  %v325_v42 = vpop.f32.mrb[5].mxu0  ;;  %v378_v43 = vpop.f32.mrb[5].mxu1 }
 0x122   : > { %v648_v44 = vsel %vm417_vm9, 1.0, %v881_v22  ;;  %v650_v45 = vsel %vm419_vm10, 1.0, %v881_v22  ;;  %vm418_vm11 = vcmp.ge.f32.partialorder %v325_v42, %v402_v17  ;;  %vm420_vm12 = vcmp.ge.f32.partialorder %v378_v43, %v402_v17  ;;  %v327_v46 = vpop.f32.mrb[6].mxu0  ;;  %v380_v47 = vpop.f32.mrb[6].mxu1 }
 0x123   : > { %v649_v48 = vsel %vm418_vm11, 1.0, %v881_v22  ;;  %v651_v49 = vsel %vm420_vm12, 1.0, %v881_v22  ;;  %vm421_vm13 = vcmp.ge.f32.partialorder %v327_v46, %v407_v39  ;;  %vm423_vm14 = vcmp.ge.f32.partialorder %v380_v47, %v407_v39  ;;  %v329_v50 = vpop.f32.mrb[7].mxu0  ;;  %v382_v51 = vpop.f32.mrb[7].mxu1 }
 0x124   : > { %v674_v52 = vpack.c.bf16 %v649_v48, %v648_v44  ;;  %v675_v53 = vpack.c.bf16 %v651_v49, %v650_v45  ;;  %v652_v54 = vsel %vm421_vm13, 1.0, %v881_v22  ;;  %v654_v55 = vsel %vm423_vm14, 1.0, %v881_v22 }
 0x125   : > { %vm422_vm15 = vcmp.ge.f32.partialorder %v329_v50, %v407_v39  ;;  %vm424_vm0 = vcmp.ge.f32.partialorder %v382_v51, %v407_v39 }
 0x126   : > { %509 = vst [vmem:[%s1047_s7 + $0x20] sm:$0xff] %v674_v52  ;;  %510 = vst [vmem:[%s1047_s7 + $0x28] sm:$0xff] %v675_v53  ;;  %v653_v56 = vsel %vm422_vm15, 1.0, %v881_v22  ;;  %v655_v57 = vsel %vm424_vm0, 1.0, %v881_v22 }
 0x127   : > { %v676_v58 = vpack.c.bf16 %v653_v56, %v652_v54  ;;  %v677_v59 = vpack.c.bf16 %v655_v57, %v654_v55 }
 0x129   : > { %511 = vst [vmem:[%s1047_s7 + $0x30] sm:$0xff] %v676_v58  ;;  %512 = vst [vmem:[%s1047_s7 + $0x38] sm:$0xff] %v677_v59 }
 0x12a   : > { %806 = shalt.err (!%p803_p5)
}
 0x12b   : > { %s807_s23 = scalar_lea.hbm %s1062_s24, 1024  ;;  %s811_s30 = scalar_lea.hbm %s1116_s3, 2048 }
 0x12c   : > { %p808_p4 = scmp.ne.s32.totalorder %s1062_s24, %s807_s23  ;;  %p812_p12 = scmp.lt.u32.totalorder %s1062_s24, %s1116_s3 }
 0x12d   : > { %p813_p1 = scmp.lt.u32.totalorder %s811_s30, %s807_s23  ;;  %p815_p8 = scmp.lt.u32.totalorder %s807_s23, %s1062_s24 }
 0x12e   : > { %p809_p7 = pnand %p808_p4, %p1124_p9 }
 0x12f   : > { %p814_p3 = por %p813_p1, %p812_p12 }
 0x130   : > { %p810_p10 = pneg %p809_p7 }
 0x131   : > { %p816_p11 = por %p815_p8, %p814_p3 }
 0x133   : > { %p817_p0 = pnand %p816_p11, %p810_p10 }
 0x135   : > { %820 = shalt.err (!%p817_p0)
}
 0x136   : > { %s883_s7 = smov 256   ;;  %s884_s19 = smov 16  }
 0x137   : > { %681 = dma.vmem_to_hbm [thread:$0]  (%p1124_p9), %s1055_s18, 1024, %s1062_s24, %s514_s6, %s883_s7, %s883_s7, %s884_s19  }
 0x138 PF: > { %s544_s21 = sand.u32 1, %s855_s12   ;;  %p1125_p6 = scmp.ne.s32.totalorder %s1121_s27, 0 }
 0x139   : > { %p1126_p13 = scmp.ge.s32.totalorder %s875_s17, 2  ;;  %s545_s15 = scalar_lea.sflag [#allocation4], %s544_s21 }
 0x13b   : > { %p688_p2 = pnand %p1126_p13, %p1125_p6 }
 0x13d   : > { %850 = dma.done.wait (!%p688_p2), %s545_s15, 1024  }
 0x13e   : > { %852 = vsyncadd (!%p688_p2), %s545_s15, 4294966272  ;;  %s19_s17 = sadd.s32 1, %s875_s17   ;;  %s1127_s12 = smov %s859_s13 }
 0x13f   : > { %p16_p5 = scmp.ge.s32.totalorder %s19_s17, 4   ;;  %s1128_s13 = smov %s863_s14 }
 0x140   : > { %s1129_s14 = smov %s961_s26  ;;  %s1130_s15 = smov %s871_s16 }
 0x141   : > { %s1131_s16 = smov %s1133_s20  ;;  %18 = sbr.rel (!%p16_p5) target bundleno = 6 (0x6), region = 77 }
 0x148   :  { %550 = vsyncpa [#allocation3], 1 }
 0x149   :  { %552 = vsyncpa [#allocation3 + $0x1], 1 }
 0x14a   :  { %553 = vsyncpa [#allocation4], 1 }
 0x14b   :  { %555 = vsyncpa [#allocation4 + $0x1], 1 }

</bundles_post_ra>
